<compile_context>
chip_gen: v5e
topology: v5e:2x2
jax: 0.10.0
libtpu: 0.0.40
codegen_flags: <defaults>
</compile_context>

<pallas_src>
import jax
import jax.numpy as jnp
import numpy as np
from jax import lax
from jax.experimental import pallas as pl
from jax.experimental.pallas import tpu as pltpu

NUM_KEYS = 3          # kjt keys = ["f1", "f2", "f3"]
BATCH = 4
NUM_EMB = 32          # rows per embedding table
EMB_DIM = 128         # embedding dim (lane-aligned)

LANE = 128
SUBLANE = 8


def _round_up(x, m):
    return ((x + m - 1) // m) * m


def _kjt_ebc_kernel(vals_ref, offs_ref, lens_ref, tables_ref, out_ref):
    """Jagged sum-pooling of all keys/bags via MXU matmuls (no scalar loops).

    vals_ref  : VMEM int32 [T_pad, 1]      padded concatenated KJT values
    offs_ref  : VMEM int32 [NB, 1]         per-bag start offsets (key-major, padded batch)
    lens_ref  : VMEM int32 [NB, 1]         per-bag lengths       (key-major, padded batch)
    tables_ref: VMEM f32   [K, E, D]       stacked embedding tables
    out_ref   : VMEM f32   [B_pad, K * D]  pooled embeddings in final lane-dense layout
    """
    T = vals_ref.shape[0]
    NB = offs_ref.shape[0]
    K, E, D = tables_ref.shape
    B = NB // K

    vals = vals_ref[...]          # [T, 1]
    offs = offs_ref[...]          # [NB, 1]
    lens = lens_ref[...]          # [NB, 1]

    # One-hot over the vocab: onehot[j, e] = (values[j] == e).
    # Padded / out-of-range values yield an all-zero row (safe, no OOB reads).
    e_iota = lax.broadcasted_iota(jnp.int32, (T, E), 1)
    onehot = (jnp.broadcast_to(vals, (T, E)) == e_iota).astype(jnp.float32)

    # Bag membership: bag_mask[b, j] = offsets[b] <= j < offsets[b] + lengths[b].
    j_iota = lax.broadcasted_iota(jnp.int32, (NB, T), 1)
    bag_mask = ((j_iota >= offs) & (j_iota < offs + lens)).astype(jnp.float32)

    # counts[b, e] = #{ j in bag b : values[j] == e }            (MXU)
    counts = jnp.dot(bag_mask, onehot, preferred_element_type=jnp.float32)  # [NB, E]

    # Sum pooling per key is counts_k @ table_k                  (MXU)
    pooled = [
        jnp.dot(counts[k * B:(k + 1) * B, :], tables_ref[k],
                preferred_element_type=jnp.float32)              # [B_pad, D]
        for k in range(K)
    ]

    # Single unmasked, lane-dense full-tile store.
    out_ref[...] = jnp.concatenate(pooled, axis=1).astype(out_ref.dtype)


def kjt_input_wrapper_forward(keys, values, tables, lengths=None, offsets=None):
    """Equivalent of KJTInputWrapper.forward(keys, values, lengths, offsets).

    Inner KJT module = sum-pooling EmbeddingBagCollection (one table per key).
    Returns the list of non-None pytree leaves of its output: a single
    [batch, num_keys * emb_dim] pooled-embedding tensor (KeyedTensor.values()).
    """
    K, E, D = tables.shape
    assert len(keys) == K

    if lengths is None:
        lengths = jnp.diff(offsets.astype(jnp.int32))
    lengths = lengths.astype(jnp.int32)
    B = lengths.shape[0] // K
    B_pad = _round_up(max(B, SUBLANE), SUBLANE)
    NB = K * B_pad

    # Pad batch to a sublane multiple; padded bags get length 0 -> pooled zeros.
    lens_kb = jnp.zeros((K, B_pad), jnp.int32).at[:, :B].set(lengths.reshape(K, B))
    lens_flat = lens_kb.reshape(NB)
    offs_flat = jnp.concatenate(
        [jnp.zeros((1,), jnp.int32), jnp.cumsum(lens_flat)[:-1]]
    )

    # Pad values to a lane multiple; padding content is never selected by bag_mask
    # (this also handles the total_values == 0 edge case).
    T = values.shape[0]
    T_pad = _round_up(max(T, LANE), LANE)
    vals_pad = jnp.zeros((T_pad,), jnp.int32).at[:T].set(values.astype(jnp.int32))

    out = pl.pallas_call(
        _kjt_ebc_kernel,
        grid=(1,),   # single step: all work is a handful of tiny MXU matmuls
        out_shape=jax.ShapeDtypeStruct((B_pad, K * D), jnp.float32),
        in_specs=[
            pl.BlockSpec((T_pad, 1), lambda i: (0, 0)),
            pl.BlockSpec((NB, 1), lambda i: (0, 0)),
            pl.BlockSpec((NB, 1), lambda i: (0, 0)),
            pl.BlockSpec((K, E, D), lambda i: (0, 0, 0)),
        ],
        out_specs=pl.BlockSpec((B_pad, K * D), lambda i: (0, 0)),
        compiler_params=pltpu.CompilerParams(
            dimension_semantics=("arbitrary",)
        ),
    )(
        vals_pad.reshape(T_pad, 1),
        offs_flat.reshape(NB, 1),
        lens_flat.reshape(NB, 1),
        tables,
    )

    # pytree.tree_leaves(output), dropping None leaves -> single tensor here.
    return [out[:B]]


def _reference_forward(values, lengths, tables):
    """Pure numpy reference for the synthetic EBC forward."""
    values = np.asarray(values)
    lengths = np.asarray(lengths)
    tables = np.asarray(tables)
    num_keys, _, emb_dim = tables.shape
    batch = lengths.shape[0] // num_keys
    offsets = np.concatenate([[0], np.cumsum(lengths)])
    per_key = []
    for k in range(num_keys):
        rows = []
        for b in range(batch):
            s, e = offsets[k * batch + b], offsets[k * batch + b + 1]
            if e > s:
                rows.append(tables[k][values[s:e]].sum(axis=0))
            else:
                rows.append(np.zeros((emb_dim,), np.float32))
        per_key.append(np.stack(rows))
    return np.transpose(np.stack(per_key), (1, 0, 2)).reshape(
        batch, num_keys * emb_dim
    )


if __name__ == "__main__":
    key = jax.random.PRNGKey(0)
    k_len, k_val, k_tab = jax.random.split(key, 3)

    kjt_keys = ["f1", "f2", "f3"]

    # KJT inputs: key-major lengths [num_keys * batch], concatenated values.
    lengths = jax.random.randint(
        k_len, (NUM_KEYS * BATCH,), minval=0, maxval=5, dtype=jnp.int32
    )
    total = int(jnp.sum(lengths))
    values = jax.random.randint(
        k_val, (max(total, 1),), minval=0, maxval=NUM_EMB, dtype=jnp.int32
    )[:total]

    # Deterministic "EmbeddingBagCollection" parameters: one table per key.
    tables = (
        jax.random.normal(k_tab, (NUM_KEYS, NUM_EMB, EMB_DIM), dtype=jnp.float32)
        * 0.05
    )

    leaves = kjt_input_wrapper_forward(kjt_keys, values, tables, lengths=lengths)
    out = jax.block_until_ready(leaves[0])

    ref = _reference_forward(values, lengths, tables)
    np.testing.assert_allclose(np.asarray(out), ref, rtol=1e-5, atol=1e-5)

    print("KERNEL_OK")
</pallas_src>

<mosaic_0001>
module attributes {stable_mosaic.version = 11 : i64} {
  func.func @_kjt_ebc_kernel(%arg0: i32, %arg1: memref<128x1xi32, #tpu.memory_space<vmem>>, %arg2: memref<24x1xi32, #tpu.memory_space<vmem>>, %arg3: memref<24x1xi32, #tpu.memory_space<vmem>>, %arg4: memref<3x32x128xf32, #tpu.memory_space<vmem>>, %arg5: memref<8x384xf32, #tpu.memory_space<vmem>>) attributes {dimension_semantics = [#tpu.dimension_semantics<arbitrary>], iteration_bounds = array<i64: 1>, scalar_prefetch = 0 : i64, scratch_operands = 0 : i64, tpu.core_type = #tpu.core_type<tc>, window_params = [{pipeline_mode = #tpu.pipeline_mode<synchronous>, transform_indices = @transform_0, window_bounds = array<i64: 128, 1>}, {pipeline_mode = #tpu.pipeline_mode<synchronous>, transform_indices = @transform_1, window_bounds = array<i64: 24, 1>}, {pipeline_mode = #tpu.pipeline_mode<synchronous>, transform_indices = @transform_2, window_bounds = array<i64: 24, 1>}, {pipeline_mode = #tpu.pipeline_mode<synchronous>, transform_indices = @transform_3, window_bounds = array<i64: 3, 32, 128>}, {pipeline_mode = #tpu.pipeline_mode<synchronous>, transform_indices = @transform_4, window_bounds = array<i64: 8, 384>}]} {
    %c0 = arith.constant 0 : index
    %c0_0 = arith.constant 0 : index
    %0 = vector.load %arg1[%c0, %c0_0] : memref<128x1xi32, #tpu.memory_space<vmem>>, vector<128x1xi32>
    %c0_1 = arith.constant 0 : index
    %c0_2 = arith.constant 0 : index
    %1 = vector.load %arg2[%c0_1, %c0_2] : memref<24x1xi32, #tpu.memory_space<vmem>>, vector<24x1xi32>
    %c0_3 = arith.constant 0 : index
    %c0_4 = arith.constant 0 : index
    %2 = vector.load %arg3[%c0_3, %c0_4] : memref<24x1xi32, #tpu.memory_space<vmem>>, vector<24x1xi32>
    %3 = tpu.iota {dimensions = array<i32: 1>} : vector<128x32xi32>
    %4 = vector.shape_cast %0 : vector<128x1xi32> to vector<128x1xi32>
    %5 = vector.broadcast %4 : vector<128x1xi32> to vector<128x32xi32>
    %6 = arith.cmpi eq, %5, %3 : vector<128x32xi32>
    %7 = arith.extui %6 : vector<128x32xi1> to vector<128x32xi32>
    %8 = arith.sitofp %7 : vector<128x32xi32> to vector<128x32xf32>
    %9 = tpu.iota {dimensions = array<i32: 1>} : vector<24x128xi32>
    %10 = vector.broadcast %1 : vector<24x1xi32> to vector<24x128xi32>
    %11 = arith.cmpi sge, %9, %10 : vector<24x128xi32>
    %12 = arith.addi %1, %2 : vector<24x1xi32>
    %13 = vector.broadcast %12 : vector<24x1xi32> to vector<24x128xi32>
    %14 = arith.cmpi slt, %9, %13 : vector<24x128xi32>
    %15 = arith.andi %11, %14 : vector<24x128xi1>
    %16 = arith.extui %15 : vector<24x128xi1> to vector<24x128xi32>
    %17 = arith.sitofp %16 : vector<24x128xi32> to vector<24x128xf32>
    %cst = arith.constant dense<0.000000e+00> : vector<24x32xf32>
    %18 = tpu.matmul %17, %8, %cst {dimension_numbers = #tpu.dot_dimension_numbers<[1], [0], [0], [1], [0, 0, 1, 1], [], []>} : vector<24x128xf32>, vector<128x32xf32>, vector<24x32xf32> -> vector<24x32xf32>
    %19 = vector.extract_strided_slice %18 {offsets = [0, 0], sizes = [8, 32], strides = [1, 1]} : vector<24x32xf32> to vector<8x32xf32>
    %c0_5 = arith.constant 0 : index
    %c0_6 = arith.constant 0 : index
    %c0_7 = arith.constant 0 : index
    %20 = vector.load %arg4[%c0_5, %c0_6, %c0_7] : memref<3x32x128xf32, #tpu.memory_space<vmem>>, vector<1x32x128xf32>
    %21 = vector.shape_cast %20 : vector<1x32x128xf32> to vector<32x128xf32>
    %cst_8 = arith.constant dense<0.000000e+00> : vector<8x128xf32>
    %22 = tpu.matmul %19, %21, %cst_8 {dimension_numbers = #tpu.dot_dimension_numbers<[1], [0], [0], [1], [0, 0, 1, 1], [], []>} : vector<8x32xf32>, vector<32x128xf32>, vector<8x128xf32> -> vector<8x128xf32>
    %23 = vector.extract_strided_slice %18 {offsets = [8, 0], sizes = [8, 32], strides = [1, 1]} : vector<24x32xf32> to vector<8x32xf32>
    %c1 = arith.constant 1 : index
    %c0_9 = arith.constant 0 : index
    %c0_10 = arith.constant 0 : index
    %24 = vector.load %arg4[%c1, %c0_9, %c0_10] : memref<3x32x128xf32, #tpu.memory_space<vmem>>, vector<1x32x128xf32>
    %25 = vector.shape_cast %24 : vector<1x32x128xf32> to vector<32x128xf32>
    %cst_11 = arith.constant dense<0.000000e+00> : vector<8x128xf32>
    %26 = tpu.matmul %23, %25, %cst_11 {dimension_numbers = #tpu.dot_dimension_numbers<[1], [0], [0], [1], [0, 0, 1, 1], [], []>} : vector<8x32xf32>, vector<32x128xf32>, vector<8x128xf32> -> vector<8x128xf32>
    %27 = vector.extract_strided_slice %18 {offsets = [16, 0], sizes = [8, 32], strides = [1, 1]} : vector<24x32xf32> to vector<8x32xf32>
    %c2 = arith.constant 2 : index
    %c0_12 = arith.constant 0 : index
    %c0_13 = arith.constant 0 : index
    %28 = vector.load %arg4[%c2, %c0_12, %c0_13] : memref<3x32x128xf32, #tpu.memory_space<vmem>>, vector<1x32x128xf32>
    %29 = vector.shape_cast %28 : vector<1x32x128xf32> to vector<32x128xf32>
    %cst_14 = arith.constant dense<0.000000e+00> : vector<8x128xf32>
    %30 = tpu.matmul %27, %29, %cst_14 {dimension_numbers = #tpu.dot_dimension_numbers<[1], [0], [0], [1], [0, 0, 1, 1], [], []>} : vector<8x32xf32>, vector<32x128xf32>, vector<8x128xf32> -> vector<8x128xf32>
    %31 = tpu.concatenate %22, %26, %30 in 1 : vector<8x128xf32>, vector<8x128xf32>, vector<8x128xf32> -> vector<8x384xf32>
    %c0_15 = arith.constant 0 : index
    %c0_16 = arith.constant 0 : index
    %32 = vector.load %arg5[%c0_15, %c0_16] : memref<8x384xf32, #tpu.memory_space<vmem>>, vector<8x384xf32>
    tpu.vector_store %arg5[%c0_15, %c0_16], %31 {strides = array<i32>} : memref<8x384xf32, #tpu.memory_space<vmem>>, vector<8x384xf32>,
    return
  }
  func.func @transform_0(%arg0: i32) -> (i32, i32) {
    %c0_i32 = arith.constant 0 : i32
    %c0_i32_0 = arith.constant 0 : i32
    %c0_i32_1 = arith.constant 0 : i32
    return %c0_i32, %c0_i32_0 : i32, i32
  }
  func.func @transform_1(%arg0: i32) -> (i32, i32) {
    %c0_i32 = arith.constant 0 : i32
    %c0_i32_0 = arith.constant 0 : i32
    %c0_i32_1 = arith.constant 0 : i32
    return %c0_i32, %c0_i32_0 : i32, i32
  }
  func.func @transform_2(%arg0: i32) -> (i32, i32) {
    %c0_i32 = arith.constant 0 : i32
    %c0_i32_0 = arith.constant 0 : i32
    %c0_i32_1 = arith.constant 0 : i32
    return %c0_i32, %c0_i32_0 : i32, i32
  }
  func.func @transform_3(%arg0: i32) -> (i32, i32, i32) {
    %c0_i32 = arith.constant 0 : i32
    %c0_i32_0 = arith.constant 0 : i32
    %c0_i32_1 = arith.constant 0 : i32
    %c0_i32_2 = arith.constant 0 : i32
    return %c0_i32, %c0_i32_0, %c0_i32_1 : i32, i32, i32
  }
  func.func @transform_4(%arg0: i32) -> (i32, i32) {
    %c0_i32 = arith.constant 0 : i32
    %c0_i32_0 = arith.constant 0 : i32
    %c0_i32_1 = arith.constant 0 : i32
    return %c0_i32, %c0_i32_0 : i32, i32
  }
}

</mosaic_0001>

<bundles_post_ra>
// kernel: tpu_custom_call.1
= control target key start
LH: loop header
LB: loop body
LE: loop exit
PB: predicated region body
PF: predicated region fallthrough
CT: control target
= control target key end

     0   :  { %v384_v3 = vmov 0   ;;  %s560_s0 = inlined_call_operand.vmem [shape: s32[128,1], index: 0, kind: input, shape index: {}]   ;;  %s561_s1 = inlined_call_operand.vmem [shape: s32[24,1], index: 1, kind: input, shape index: {}]   ;;  %s562_s2 = inlined_call_operand.vmem [shape: s32[24,1], index: 2, kind: input, shape index: {}]   ;;  %s563_s3 = inlined_call_operand.vmem [shape: f32[3,32,128], index: 3, kind: input, shape index: {}]   ;;  %s564_s4 = inlined_call_operand.hbm [shape: f32[8,384], index: 4, kind: output, shape index: {}]  }
   0x1   :  { %v33_v0 = vld [vmem:[%s560_s0 + $0x78] sm:$0xff]  ;;  %v31_v1 = vld [vmem:[%s560_s0 + $0x68] sm:$0xff]  ;;  %357 = vset.pattern.permute.xlu2 %v384_v3  ;;  %356 = vset.pattern.permute.xlu1 %v384_v3 }
   0x2   :  { %v29_v2 = vld [vmem:[%s560_s0 + $0x58] sm:$0xff]  ;;  %355 = vset.pattern.permute.xlu0 %v384_v3  ;;  %82 = vperm.xlu1 %356, %v31_v1  }
   0x3   :  { %88 = vperm.xlu0 %355, %v33_v0   ;;  %76 = vperm.xlu2 %357, %v29_v2  }
   0x4   :  { %9 = vsyncpa [#allocation3], 0  ;;  %v30_v4 = vld [vmem:[%s560_s0 + $0x60] sm:$0xff]  ;;  %v32_v5 = vld [vmem:[%s560_s0 + $0x70] sm:$0xff]  ;;  %v40_v27 = vlaneseq  ;;  %v385_v32 = vmov 1.0   ;;  %s386_s28 = smov [#allocation2]  }
   0x5   :  { %v28_v6 = vld [vmem:[%s560_s0 + $0x50] sm:$0xff]  ;;  %v26_v7 = vld [vmem:[%s560_s0 + $0x40] sm:$0xff]  ;;  %v27_v8 = vld [vmem:[%s560_s0 + $0x48] sm:$0xff]  ;;  %s292_s29 = sshll.u32 %s386_s28, 4  ;;  %s294_s5 = sshll.u32 %s564_s4, 4  ;;  %s293_s29 = int_to_ptr.vmem [resolvable:$true] %s292_s29  ;;  %s295_s5 = int_to_ptr.hbm [resolvable:$true] %s294_s5 }
   0x6   :  { %v25_v9 = vld [vmem:[%s560_s0 + $0x38] sm:$0xff]  ;;  %v23_v10 = vld [vmem:[%s560_s0 + $0x28] sm:$0xff]  ;;  %v24_v11 = vld [vmem:[%s560_s0 + $0x30] sm:$0xff]  ;;  %v478_v28 = vand.u32 127, %v40_v27 }
   0x7   :  { %v22_v12 = vld [vmem:[%s560_s0 + $0x20] sm:$0xff]  ;;  %v20_v13 = vld [vmem:[%s560_s0 + $0x10] sm:$0xff]  ;;  %v21_v14 = vld [vmem:[%s560_s0 + $0x18] sm:$0xff] }
   0x8   :  { %v19_v15 = vld [vmem:[%s560_s0 + $0x8] sm:$0xff]  ;;  %v34_v16 = vld [vmem:[%s561_s1] sm:$0xff]  ;;  %v36_v23 = vld [vmem:[%s561_s1 + $0x10] sm:$0xff] }
   0x9   :  { %v37_v17 = vld [vmem:[%s562_s2] sm:$0xff]  ;;  %v35_v20 = vld [vmem:[%s561_s1 + $0x8] sm:$0xff]  ;;  %v39_v24 = vld [vmem:[%s562_s2 + $0x10] sm:$0xff] }
   0xa   :  { %79 = vperm.xlu1 %356, %v30_v4   ;;  %v150_v18 = vadd.s32 %v37_v17, %v34_v16  ;;  %v18_v19 = vld [vmem:[%s560_s0] sm:$0xff]  ;;  %v38_v21 = vld [vmem:[%s562_s2 + $0x8] sm:$0xff]  ;;  %v152_v25 = vadd.s32 %v39_v24, %v36_v23  ;;  %v203_v42 = vld [vmem:[%s563_s3 + $0x18] sm:$0xff] }
   0xb   :  { %85 = vperm.xlu0 %355, %v32_v5   ;;  %73 = vperm.xlu2 %357, %v28_v6   ;;  %v151_v22 = vadd.s32 %v38_v21, %v35_v20  ;;  %v202_v43 = vld [vmem:[%s563_s3 + $0x10] sm:$0xff]  ;;  %v201_v44 = vld [vmem:[%s563_s3 + $0x8] sm:$0xff]  ;;  %v200_v54 = vld [vmem:[%s563_s3] sm:$0xff] }
   0xc   :  { %220 = vmatpush.msra.mxu1 %v203_v42  ;;  %v345_v55 = vld [vmem:[%s563_s3 + $0x38] sm:$0xff]  ;;  %v344_v56 = vld [vmem:[%s563_s3 + $0x30] sm:$0xff]  ;;  %v343_v57 = vld [vmem:[%s563_s3 + $0x28] sm:$0xff] }
   0xd   :  { %248 = vmatpush.msra.mxu2 %v345_v55  ;;  %v342_v58 = vld [vmem:[%s563_s3 + $0x20] sm:$0xff]  ;;  %v350_v59 = vld [vmem:[%s563_s3 + $0x58] sm:$0xff]  ;;  %v349_v60 = vld [vmem:[%s563_s3 + $0x50] sm:$0xff] }
   0xe   :  { %221 = vmatpush.msra.mxu1 %v202_v43  ;;  %276 = vmatpush.msra.mxu3 %v350_v59  ;;  %v348_v61 = vld [vmem:[%s563_s3 + $0x48] sm:$0xff]  ;;  %v347_v62 = vld [vmem:[%s563_s3 + $0x40] sm:$0xff] }
   0xf   :  { %249 = vmatpush.msra.mxu2 %v344_v56 }
  0x10   :  { %222 = vmatpush.msra.mxu1 %v201_v44  ;;  %277 = vmatpush.msra.mxu3 %v349_v60 }
  0x11   :  { %250 = vmatpush.msra.mxu2 %v343_v57 }
  0x12   :  { %67 = vperm.xlu1 %356, %v26_v7   ;;  %223 = vmatpush.msra.mxu1 %v200_v54 }
  0x13   :  { %70 = vperm.xlu0 %355, %v27_v8   ;;  %64 = vperm.xlu2 %357, %v25_v9  }
  0x14   :  { %251 = vmatpush.msra.mxu2 %v342_v58  ;;  %278 = vmatpush.msra.mxu3 %v348_v61 }
  0x16   :  { %279 = vmatpush.msra.mxu3 %v347_v62 }
  0x1a   :  { %58 = vperm.xlu1 %356, %v23_v10  }
  0x1b   :  { %61 = vperm.xlu0 %355, %v24_v11   ;;  %55 = vperm.xlu2 %357, %v22_v12  }
  0x22   :  { %49 = vperm.xlu1 %356, %v20_v13  }
  0x23   :  { %52 = vperm.xlu0 %355, %v21_v14   ;;  %46 = vperm.xlu2 %357, %v19_v15  }
  0x2a   :  { %139 = vperm.xlu1 %356, %v34_v16  }
  0x2b   :  { %154 = vperm.xlu2 %357, %v150_v18   ;;  %43 = vperm.xlu0 %355, %v18_v19  }
  0x32   :  { %157 = vperm.xlu1 %356, %v151_v22  }
  0x33   :  { %145 = vperm.xlu2 %357, %v36_v23   ;;  %142 = vperm.xlu0 %355, %v35_v20  }
  0x3b   :  { %160 = vperm.xlu0 %355, %v152_v25  }
  0x5d   :  { %v77_v26 = vpop.permute.xlu2 %76 }
  0x5e   :  { %vm101_vm4 = vcmp.eq.s32.totalorder %v77_v26, %v478_v28 }
  0x65   :  { %v74_v29 = vpop.permute.xlu2 %73 }
  0x66   :  { %vm100_vm5 = vcmp.eq.s32.totalorder %v74_v29, %v478_v28 }
  0x6d   :  { %v65_v33 = vpop.permute.xlu2 %64 }
  0x6e   :  { %vm97_vm8 = vcmp.eq.s32.totalorder %v65_v33, %v478_v28 }
  0x74   :  { %v83_v30 = vpop.permute.xlu1 %82 }
  0x75   :  { %v89_v31 = vpop.permute.xlu0 %88  ;;  %vm103_vm2 = vcmp.eq.s32.totalorder %v83_v30, %v478_v28  ;;  %v56_v38 = vpop.permute.xlu2 %55 }
  0x76   :  { %vm105_vm0 = vcmp.eq.s32.totalorder %v89_v31, %v478_v28  ;;  %vm94_vm11 = vcmp.eq.s32.totalorder %v56_v38, %v478_v28 }
  0x77   :  { %322 = vmatpush.msk.msra.mxu0 %vm105_vm0, %v385_v32 }
  0x7c   :  { %v80_v34 = vpop.permute.xlu1 %79 }
  0x7d   :  { %v86_v35 = vpop.permute.xlu0 %85  ;;  %vm102_vm3 = vcmp.eq.s32.totalorder %v80_v34, %v478_v28  ;;  %v47_v41 = vpop.permute.xlu2 %46 }
  0x7e   :  { %vm104_vm1 = vcmp.eq.s32.totalorder %v86_v35, %v478_v28  ;;  %vm91_vm14 = vcmp.eq.s32.totalorder %v47_v41, %v478_v28 }
  0x7f   :  { %323 = vmatpush.msk.msra.mxu0 %vm104_vm1, %v385_v32 }
  0x81   :  { %324 = vmatpush.msk.msra.mxu0 %vm103_vm2, %v385_v32 }
  0x83   :  { %325 = vmatpush.msk.msra.mxu0 %vm102_vm3, %v385_v32 }
  0x84   :  { %v68_v36 = vpop.permute.xlu1 %67 }
  0x85   :  { %326 = vmatpush.msk.msra.mxu0 %vm101_vm4, %v385_v32  ;;  %v71_v37 = vpop.permute.xlu0 %70  ;;  %vm98_vm7 = vcmp.eq.s32.totalorder %v68_v36, %v478_v28  ;;  %v155_v47 = vpop.permute.xlu2 %154 }
  0x86   :  { %vm99_vm6 = vcmp.eq.s32.totalorder %v71_v37, %v478_v28  ;;  %vm162_vm15 = vcmp.lt.s32.totalorder %v478_v28, %v155_v47 }
  0x87   :  { %327 = vmatpush.msk.msra.mxu0 %vm100_vm5, %v385_v32 }
  0x89   :  { %328 = vmatpush.msk.msra.mxu0 %vm99_vm6, %v385_v32 }
  0x8b   :  { %329 = vmatpush.msk.msra.mxu0 %vm98_vm7, %v385_v32 }
  0x8c   :  { %v59_v39 = vpop.permute.xlu1 %58 }
  0x8d   :  { %330 = vmatpush.msk.msra.mxu0 %vm97_vm8, %v385_v32  ;;  %v62_v40 = vpop.permute.xlu0 %61  ;;  %vm95_vm10 = vcmp.eq.s32.totalorder %v59_v39, %v478_v28  ;;  %v146_v52 = vpop.permute.xlu2 %145 }
  0x8e   :  { %vm96_vm9 = vcmp.eq.s32.totalorder %v62_v40, %v478_v28  ;;  %vm149_vm6 = vcmp.ge.s32.totalorder %v478_v28, %v146_v52 }
  0x8f   :  { %331 = vmatpush.msk.msra.mxu0 %vm96_vm9, %v385_v32  ;;  %vm204_vm9 = vcmask 261120  }
  0x91   :  { %332 = vmatpush.msk.msra.mxu0 %vm95_vm10, %v385_v32 }
  0x93   :  { %333 = vmatpush.msk.msra.mxu0 %vm94_vm11, %v385_v32 }
  0x94   :  { %v50_v45 = vpop.permute.xlu1 %49 }
  0x95   :  { %v53_v46 = vpop.permute.xlu0 %52  ;;  %vm92_vm13 = vcmp.eq.s32.totalorder %v50_v45, %v478_v28 }
  0x96   :  { %vm93_vm12 = vcmp.eq.s32.totalorder %v53_v46, %v478_v28 }
  0x97   :  { %334 = vmatpush.msk.msra.mxu0 %vm93_vm12, %v385_v32 }
  0x99   :  { %335 = vmatpush.msk.msra.mxu0 %vm92_vm13, %v385_v32 }
  0x9b   :  { %336 = vmatpush.msk.msra.mxu0 %vm91_vm14, %v385_v32 }
  0x9c   :  { %v140_v48 = vpop.permute.xlu1 %139 }
  0x9d   :  { %vm147_vm0 = vcmp.ge.s32.totalorder %v478_v28, %v140_v48  ;;  %v44_v49 = vpop.permute.xlu0 %43 }
  0x9e   :  { %vm165_vm1 = vmand %vm147_vm0, %vm162_vm15  ;;  %vm90_vm2 = vcmp.eq.s32.totalorder %v44_v49, %v478_v28 }
  0x9f   :  { %337 = vmatpush.msk.msra.mxu0 %vm90_vm2, %v385_v32 }
  0xa0   :  { %338 = vmatmul.msk.f32.vlgmr.msra.gmra.mxu0 %vm165_vm1, %v385_v32 }
  0xa4   :  { %v158_v50 = vpop.permute.xlu1 %157 }
  0xa5   :  { %vm163_vm3 = vcmp.lt.s32.totalorder %v478_v28, %v158_v50  ;;  %v143_v51 = vpop.permute.xlu0 %142 }
  0xa6   :  { %vm148_vm4 = vcmp.ge.s32.totalorder %v478_v28, %v143_v51 }
  0xa7   :  { %vm166_vm5 = vmand %vm148_vm4, %vm163_vm3 }
  0xa8   :  { %339 = vmatmul.msk.f32.gmra.mxu0 %vm166_vm5, %v385_v32 }
  0xad   :  { %v161_v53 = vpop.permute.xlu0 %160 }
  0xae   :  { %vm164_vm7 = vcmp.lt.s32.totalorder %v478_v28, %v161_v53 }
  0xaf   :  { %vm167_vm8 = vmand %vm149_vm6, %vm164_vm7 }
  0xb0   :  { %340 = vmatmul.msk.f32.gmra.mxu0 %vm167_vm8, %v385_v32 }
 0x11d   :  { %v191_v63 = vpop.f32.mrf.mxu0 }
 0x11e   :  { %341 = vmatmul.msk.f32.vlgmr.msra.gmra.mxu1 %vm204_vm9, %v191_v63 }
 0x125   :  { %v194_v0 = vpop.f32.mrf.mxu0 }
 0x126   :  { %346 = vmatmul.msk.f32.vlgmr.msra.gmra.mxu2 %vm204_vm9, %v194_v0 }
 0x12d   :  { %v197_v1 = vpop.f32.mrf.mxu0 }
 0x12e   :  { %351 = vmatmul.msk.f32.vlgmr.msra.gmra.mxu3 %vm204_vm9, %v197_v1 }
 0x19b   :  { %v225_v2 = vpop.f32.mrf.mxu1 }
 0x19c   :  { %284 = vst [vmem:[#allocation2] sm:$0xff] %v225_v2 }
 0x1a9   :  { %v253_v3 = vpop.f32.mrf.mxu2 }
 0x1aa   :  { %285 = vst [vmem:[#allocation2 + $0x8] sm:$0xff] %v253_v3 }
 0x1b1   :  { %v281_v4 = vpop.f32.mrf.mxu3 }
 0x1b2   :  { %286 = vst [vmem:[#allocation2 + $0x10] sm:$0xff] %v281_v4 }
 0x1b3   :  { %297 = dma.vmem_to_hbm [thread:$0]  %s293_s29, 384, %s295_s5, [#allocation3]  }
 0x1b4   :  { %382 = dma.done.wait [#allocation3], 384  }
 0x1b5   :  { %383 = vsyncadd [#allocation3], 4294966912 }
 0x1b6   :  { %302 = vsyncpa [#allocation3], 1 }

</bundles_post_ra>
